<compile_context>
chip_gen: v7x
topology: tpu7x:2x2x1
jax: 0.10.0
libtpu: 0.0.40
codegen_flags: <defaults>
</compile_context>

<pallas_src>
import jax
import jax.numpy as jnp
from jax.experimental import pallas as pl
from jax.experimental.pallas import tpu as pltpu


def _semantic_attn_kernel(z_ref, w1_ref, b1_ref, w2_ref, o_ref):
    """One (branch, N-tile) step: project -> softmax over M -> weighted sum.

    z_ref : (M, Nt, D)   -- M-major so z_ref[m] is a cheap leading-axis slice
    w1_ref: (D, H)   b1_ref: (1, H)   w2_ref: (1, H)
    o_ref : (Nt, D)
    """
    M, Nt, _ = z_ref.shape
    w1 = w1_ref[...].astype(jnp.bfloat16)   # bf16 MXU inputs (f32 accumulate)
    b1 = b1_ref[...]                        # (1, H) f32
    w2 = w2_ref[...]                        # (1, H) f32

    # Single fused MXU matmul over all M semantic nodes.  The reshape only
    # collapses the two leading dims (Nt % 8 == 0 whenever N allows it), so it
    # stays within (8,128) tile boundaries -> no VMEM relayout copy.
    z_all = z_ref[...]                               # (M, Nt, D)
    hid = jnp.tanh(
        jnp.dot(z_all.reshape(M * Nt, -1).astype(jnp.bfloat16), w1,
                preferred_element_type=jnp.float32) + b1)           # (M*Nt, H)
    score_all = jnp.sum(hid * w2, axis=-1, keepdims=True)           # (M*Nt, 1)

    # Per-node scores as sublane-aligned static 2-D slices (Nt, 1).
    scores = [score_all[m * Nt:(m + 1) * Nt] for m in range(M)]

    # Softmax over the M semantic nodes (PyTorch dim=1): pure VPU elementwise,
    # all in f32, no cross-lane reductions.
    m_max = scores[0]
    for s in scores[1:]:
        m_max = jnp.maximum(m_max, s)
    exps = [jnp.exp(s - m_max) for s in scores]
    denom = exps[0]
    for e in exps[1:]:
        denom = denom + e
    inv = pl.reciprocal(denom, approx=True)     # EUP slot, off the VPU path

    # Beta-weighted sum over M, accumulated in f32 without materializing any
    # (Nt, M, D) broadcast product.
    acc = (exps[0] * inv) * z_ref[0].astype(jnp.float32)
    for m in range(1, M):
        acc = acc + (exps[m] * inv) * z_ref[m].astype(jnp.float32)
    o_ref[...] = acc.astype(o_ref.dtype)


def _pick_block_n(n, m, d, vmem_budget_bytes=8 << 20):
    """Largest N tile that (a) divides N, (b) is a multiple of 8 when possible,
    (c) keeps the double-buffered f32 z tile under a conservative VMEM budget
    (valid for v5e/v6e 32 MiB scoped default and v7x's 64 MiB physical VMEM)."""
    for cand in (512, 256, 128, 64, 32, 16, 8):
        if cand <= n and n % cand == 0:
            # 2x double-buffered z block + output block + hidden activations.
            if 2 * m * cand * d * 4 + 2 * cand * d * 4 <= vmem_budget_bytes:
                return cand
    return n


def semantic_attention_fused(z, w1, b1, w2, *, block_n=None):
    """Fused SemanticAttention for B stacked branches.

    z : (B, N, M, D)   w1 : (B, D, H)   b1 : (B, 1, H)   w2 : (B, 1, H)
    returns (B, N, D)
    """
    B, N, M, D = z.shape
    H = w1.shape[-1]
    if block_n is None or N % block_n != 0:
        block_n = _pick_block_n(N, M, D)

    # M-major layout so the kernel only ever indexes the leading axis of the
    # z block (wrapper-side layout plumbing, no in-kernel relayout).
    zt = jnp.transpose(z, (0, 2, 1, 3))          # (B, M, N, D)

    grid = (B, N // block_n)
    return pl.pallas_call(
        _semantic_attn_kernel,
        out_shape=jax.ShapeDtypeStruct((B, N, D), z.dtype),
        grid=grid,
        in_specs=[
            pl.BlockSpec((None, M, block_n, D), lambda b, i: (b, 0, i, 0)),
            pl.BlockSpec((None, D, H), lambda b, i: (b, 0, 0)),
            pl.BlockSpec((None, 1, H), lambda b, i: (b, 0, 0)),
            pl.BlockSpec((None, 1, H), lambda b, i: (b, 0, 0)),
        ],
        out_specs=pl.BlockSpec((None, block_n, D), lambda b, i: (b, i, 0)),
        compiler_params=pltpu.CompilerParams(
            dimension_semantics=("parallel", "parallel")),
    )(zt, w1, b1, w2)


def init_params(key, in_size, hidden_size):
    """Deterministic parameters for the 3 projection MLPs."""
    params = []
    for i in range(3):
        k1, k2, k3, key = jax.random.split(jax.random.fold_in(key, i), 4)
        w1 = jax.random.normal(k1, (in_size, hidden_size), jnp.float32) * 0.1
        b1 = jax.random.normal(k2, (1, hidden_size), jnp.float32) * 0.1
        # Linear(hidden, 1, bias=False) weight, stored as a (1, H) row vector.
        w2_row = jax.random.normal(k3, (1, hidden_size), jnp.float32) * 0.1
        params.append((w1, b1, w2_row))
    return params


def semantic_attention_forward(params, semantic, doc_len, h, *, block_n=None):
    """Mirrors SemanticAttention.forward (doc_len unused, as in the reference).

    Non-empty branches with identical shapes are stacked and run in ONE fused
    pallas_call; empty metapaths fall back to h['emo'/'cau'/'pair'].
    """
    # TODO(synk): the empty-metapath fallback and per-branch grouping are
    # data-dependent Python control flow (as in the PyTorch reference), so
    # they stay in the wrapper rather than inside the kernel.
    fallback = ("emo", "cau", "pair")
    res = [None] * len(semantic)

    groups = {}  # shape -> list of branch indices sharing that z shape
    for i, z in enumerate(semantic):
        if z.shape[0] == 0:                      # len(z) == 0 in PyTorch
            res[i] = h[fallback[i]]
        else:
            groups.setdefault(tuple(z.shape), []).append(i)

    for _, idxs in groups.items():
        zs = jnp.stack([semantic[i] for i in idxs], axis=0)       # (B, N, M, D)
        w1s = jnp.stack([params[i][0] for i in idxs], axis=0)     # (B, D, H)
        b1s = jnp.stack([params[i][1] for i in idxs], axis=0)     # (B, 1, H)
        w2s = jnp.stack([params[i][2] for i in idxs], axis=0)     # (B, 1, H)
        out = semantic_attention_fused(zs, w1s, b1s, w2s, block_n=block_n)
        for k, i in enumerate(idxs):
            res[i] = out[k]
    return res


def _reference_branch(z, w1, b1, w2_row):
    """Pure-JAX f32 reference for correctness checking."""
    hid = jnp.tanh(z @ w1 + b1[0])                           # (N, M, H)
    w = jnp.sum(hid * w2_row[0], axis=-1, keepdims=True)     # (N, M, 1)
    beta = jax.nn.softmax(w, axis=1)
    return jnp.sum(beta * z, axis=1)                         # (N, D)


if __name__ == "__main__":
    key = jax.random.PRNGKey(0)
    N, M, D, H = 16, 8, 32, 32                   # docs, nodes/doc, in_size, hidden

    kz0, kz1, kh0, kh1, kh2, kp = jax.random.split(key, 6)
    z0 = jax.random.normal(kz0, (N, M, D), jnp.float32)
    z1 = jax.random.normal(kz1, (N, M, D), jnp.float32)
    z2 = jnp.zeros((0, M, D), jnp.float32)       # empty metapath -> fallback path
    semantic = [z0, z1, z2]

    h = {
        "emo": jax.random.normal(kh0, (N, D), jnp.float32),
        "cau": jax.random.normal(kh1, (N, D), jnp.float32),
        "pair": jax.random.normal(kh2, (N, D), jnp.float32),
    }
    doc_len = jnp.full((N,), M, jnp.int32)       # unused, kept for signature parity

    params = init_params(kp, D, H)

    # block_n=8 -> grid = (2 fused branches, 2 N-tiles): exercises the tiling.
    res = semantic_attention_forward(params, semantic, doc_len, h, block_n=8)
    res = [jax.block_until_ready(r) for r in res]

    # Correctness check vs pure-JAX f32 reference.  Tolerance is loosened to
    # 3e-2 because the kernel uses bf16 MXU inputs + approx reciprocal.
    ok = True
    for i, z in enumerate(semantic):
        if z.shape[0] == 0:
            expect = h[("emo", "cau", "pair")[i]]
        else:
            expect = _reference_branch(z, *params[i])
        ok = ok and bool(jnp.allclose(res[i], expect, atol=3e-2, rtol=3e-2))

    if ok:
        print("KERNEL_OK")
    else:
        raise SystemExit("mismatch vs reference")
</pallas_src>

<mosaic_0001>
module attributes {stable_mosaic.version = 11 : i64} {
  func.func @_semantic_attn_kernel(%arg0: i32, %arg1: i32, %arg2: memref<1x8x8x32xf32, #tpu.memory_space<vmem>>, %arg3: memref<1x32x32xf32, #tpu.memory_space<vmem>>, %arg4: memref<1x1x32xf32, #tpu.memory_space<vmem>>, %arg5: memref<1x1x32xf32, #tpu.memory_space<vmem>>, %arg6: memref<1x8x32xf32, #tpu.memory_space<vmem>>) attributes {dimension_semantics = [#tpu.dimension_semantics<parallel>, #tpu.dimension_semantics<parallel>], iteration_bounds = array<i64: 2, 2>, scalar_prefetch = 0 : i64, scratch_operands = 0 : i64, tpu.core_type = #tpu.core_type<tc>, window_params = [{transform_indices = @transform_0, window_bounds = array<i64: 1, 8, 8, 32>}, {transform_indices = @transform_1, window_bounds = array<i64: 1, 32, 32>}, {transform_indices = @transform_2, window_bounds = array<i64: 1, 1, 32>}, {transform_indices = @transform_3, window_bounds = array<i64: 1, 1, 32>}, {transform_indices = @transform_4, window_bounds = array<i64: 1, 8, 32>}]} {
    %c0 = arith.constant 0 : index
    %c0_0 = arith.constant 0 : index
    %c0_1 = arith.constant 0 : index
    %0 = vector.load %arg3[%c0, %c0_0, %c0_1] : memref<1x32x32xf32, #tpu.memory_space<vmem>>, vector<1x32x32xf32>
    %1 = vector.shape_cast %0 : vector<1x32x32xf32> to vector<32x32xf32>
    %2 = arith.truncf %1 : vector<32x32xf32> to vector<32x32xbf16>
    %c0_2 = arith.constant 0 : index
    %c0_3 = arith.constant 0 : index
    %c0_4 = arith.constant 0 : index
    %3 = vector.load %arg4[%c0_2, %c0_3, %c0_4] : memref<1x1x32xf32, #tpu.memory_space<vmem>>, vector<1x1x32xf32>
    %4 = vector.shape_cast %3 : vector<1x1x32xf32> to vector<1x32xf32>
    %c0_5 = arith.constant 0 : index
    %c0_6 = arith.constant 0 : index
    %c0_7 = arith.constant 0 : index
    %5 = vector.load %arg5[%c0_5, %c0_6, %c0_7] : memref<1x1x32xf32, #tpu.memory_space<vmem>>, vector<1x1x32xf32>
    %6 = vector.shape_cast %5 : vector<1x1x32xf32> to vector<1x32xf32>
    %c0_8 = arith.constant 0 : index
    %c0_9 = arith.constant 0 : index
    %c0_10 = arith.constant 0 : index
    %c0_11 = arith.constant 0 : index
    %7 = vector.load %arg2[%c0_8, %c0_9, %c0_10, %c0_11] : memref<1x8x8x32xf32, #tpu.memory_space<vmem>>, vector<1x8x8x32xf32>
    %8 = vector.shape_cast %7 : vector<1x8x8x32xf32> to vector<8x8x32xf32>
    %9 = vector.shape_cast %8 : vector<8x8x32xf32> to vector<64x32xf32>
    %10 = arith.truncf %9 : vector<64x32xf32> to vector<64x32xbf16>
    %cst = arith.constant dense<0.000000e+00> : vector<64x32xf32>
    %11 = tpu.matmul %10, %2, %cst {dimension_numbers = #tpu.dot_dimension_numbers<[1], [0], [0], [1], [0, 0, 1, 1], [], []>} : vector<64x32xbf16>, vector<32x32xbf16>, vector<64x32xf32> -> vector<64x32xf32>
    %12 = vector.broadcast %4 : vector<1x32xf32> to vector<64x32xf32>
    %13 = arith.addf %11, %12 : vector<64x32xf32>
    %14 = math.tanh %13 : vector<64x32xf32>
    %15 = vector.broadcast %6 : vector<1x32xf32> to vector<64x32xf32>
    %16 = arith.mulf %14, %15 : vector<64x32xf32>
    %cst_12 = arith.constant dense<0.000000e+00> : vector<64xf32>
    %17 = vector.multi_reduction <add>, %16, %cst_12 [1] : vector<64x32xf32> to vector<64xf32>
    %18 = vector.shape_cast %17 : vector<64xf32> to vector<64x1xf32>
    %19 = vector.extract_strided_slice %18 {offsets = [0, 0], sizes = [8, 1], strides = [1, 1]} : vector<64x1xf32> to vector<8x1xf32>
    %20 = vector.extract_strided_slice %18 {offsets = [8, 0], sizes = [8, 1], strides = [1, 1]} : vector<64x1xf32> to vector<8x1xf32>
    %21 = vector.extract_strided_slice %18 {offsets = [16, 0], sizes = [8, 1], strides = [1, 1]} : vector<64x1xf32> to vector<8x1xf32>
    %22 = vector.extract_strided_slice %18 {offsets = [24, 0], sizes = [8, 1], strides = [1, 1]} : vector<64x1xf32> to vector<8x1xf32>
    %23 = vector.extract_strided_slice %18 {offsets = [32, 0], sizes = [8, 1], strides = [1, 1]} : vector<64x1xf32> to vector<8x1xf32>
    %24 = vector.extract_strided_slice %18 {offsets = [40, 0], sizes = [8, 1], strides = [1, 1]} : vector<64x1xf32> to vector<8x1xf32>
    %25 = vector.extract_strided_slice %18 {offsets = [48, 0], sizes = [8, 1], strides = [1, 1]} : vector<64x1xf32> to vector<8x1xf32>
    %26 = vector.extract_strided_slice %18 {offsets = [56, 0], sizes = [8, 1], strides = [1, 1]} : vector<64x1xf32> to vector<8x1xf32>
    %27 = arith.maximumf %19, %20 : vector<8x1xf32>
    %28 = arith.maximumf %27, %21 : vector<8x1xf32>
    %29 = arith.maximumf %28, %22 : vector<8x1xf32>
    %30 = arith.maximumf %29, %23 : vector<8x1xf32>
    %31 = arith.maximumf %30, %24 : vector<8x1xf32>
    %32 = arith.maximumf %31, %25 : vector<8x1xf32>
    %33 = arith.maximumf %32, %26 : vector<8x1xf32>
    %34 = arith.subf %19, %33 : vector<8x1xf32>
    %35 = math.exp %34 : vector<8x1xf32>
    %36 = arith.subf %20, %33 : vector<8x1xf32>
    %37 = math.exp %36 : vector<8x1xf32>
    %38 = arith.subf %21, %33 : vector<8x1xf32>
    %39 = math.exp %38 : vector<8x1xf32>
    %40 = arith.subf %22, %33 : vector<8x1xf32>
    %41 = math.exp %40 : vector<8x1xf32>
    %42 = arith.subf %23, %33 : vector<8x1xf32>
    %43 = math.exp %42 : vector<8x1xf32>
    %44 = arith.subf %24, %33 : vector<8x1xf32>
    %45 = math.exp %44 : vector<8x1xf32>
    %46 = arith.subf %25, %33 : vector<8x1xf32>
    %47 = math.exp %46 : vector<8x1xf32>
    %48 = arith.subf %26, %33 : vector<8x1xf32>
    %49 = math.exp %48 : vector<8x1xf32>
    %50 = arith.addf %35, %37 : vector<8x1xf32>
    %51 = arith.addf %50, %39 : vector<8x1xf32>
    %52 = arith.addf %51, %41 : vector<8x1xf32>
    %53 = arith.addf %52, %43 : vector<8x1xf32>
    %54 = arith.addf %53, %45 : vector<8x1xf32>
    %55 = arith.addf %54, %47 : vector<8x1xf32>
    %56 = arith.addf %55, %49 : vector<8x1xf32>
    %57 = tpu.reciprocal %56 {approx = true} : vector<8x1xf32> -> vector<8x1xf32>
    %58 = arith.mulf %35, %57 : vector<8x1xf32>
    %c0_13 = arith.constant 0 : index
    %c0_14 = arith.constant 0 : index
    %c0_15 = arith.constant 0 : index
    %c0_16 = arith.constant 0 : index
    %59 = vector.load %arg2[%c0_13, %c0_14, %c0_15, %c0_16] : memref<1x8x8x32xf32, #tpu.memory_space<vmem>>, vector<1x1x8x32xf32>
    %60 = vector.shape_cast %59 : vector<1x1x8x32xf32> to vector<8x32xf32>
    %61 = vector.broadcast %58 : vector<8x1xf32> to vector<8x32xf32>
    %62 = arith.mulf %61, %60 : vector<8x32xf32>
    %63 = arith.mulf %37, %57 : vector<8x1xf32>
    %c0_17 = arith.constant 0 : index
    %c1 = arith.constant 1 : index
    %c0_18 = arith.constant 0 : index
    %c0_19 = arith.constant 0 : index
    %64 = vector.load %arg2[%c0_17, %c1, %c0_18, %c0_19] : memref<1x8x8x32xf32, #tpu.memory_space<vmem>>, vector<1x1x8x32xf32>
    %65 = vector.shape_cast %64 : vector<1x1x8x32xf32> to vector<8x32xf32>
    %66 = vector.broadcast %63 : vector<8x1xf32> to vector<8x32xf32>
    %67 = arith.mulf %66, %65 : vector<8x32xf32>
    %68 = arith.addf %62, %67 : vector<8x32xf32>
    %69 = arith.mulf %39, %57 : vector<8x1xf32>
    %c0_20 = arith.constant 0 : index
    %c2 = arith.constant 2 : index
    %c0_21 = arith.constant 0 : index
    %c0_22 = arith.constant 0 : index
    %70 = vector.load %arg2[%c0_20, %c2, %c0_21, %c0_22] : memref<1x8x8x32xf32, #tpu.memory_space<vmem>>, vector<1x1x8x32xf32>
    %71 = vector.shape_cast %70 : vector<1x1x8x32xf32> to vector<8x32xf32>
    %72 = vector.broadcast %69 : vector<8x1xf32> to vector<8x32xf32>
    %73 = arith.mulf %72, %71 : vector<8x32xf32>
    %74 = arith.addf %68, %73 : vector<8x32xf32>
    %75 = arith.mulf %41, %57 : vector<8x1xf32>
    %c0_23 = arith.constant 0 : index
    %c3 = arith.constant 3 : index
    %c0_24 = arith.constant 0 : index
    %c0_25 = arith.constant 0 : index
    %76 = vector.load %arg2[%c0_23, %c3, %c0_24, %c0_25] : memref<1x8x8x32xf32, #tpu.memory_space<vmem>>, vector<1x1x8x32xf32>
    %77 = vector.shape_cast %76 : vector<1x1x8x32xf32> to vector<8x32xf32>
    %78 = vector.broadcast %75 : vector<8x1xf32> to vector<8x32xf32>
    %79 = arith.mulf %78, %77 : vector<8x32xf32>
    %80 = arith.addf %74, %79 : vector<8x32xf32>
    %81 = arith.mulf %43, %57 : vector<8x1xf32>
    %c0_26 = arith.constant 0 : index
    %c4 = arith.constant 4 : index
    %c0_27 = arith.constant 0 : index
    %c0_28 = arith.constant 0 : index
    %82 = vector.load %arg2[%c0_26, %c4, %c0_27, %c0_28] : memref<1x8x8x32xf32, #tpu.memory_space<vmem>>, vector<1x1x8x32xf32>
    %83 = vector.shape_cast %82 : vector<1x1x8x32xf32> to vector<8x32xf32>
    %84 = vector.broadcast %81 : vector<8x1xf32> to vector<8x32xf32>
    %85 = arith.mulf %84, %83 : vector<8x32xf32>
    %86 = arith.addf %80, %85 : vector<8x32xf32>
    %87 = arith.mulf %45, %57 : vector<8x1xf32>
    %c0_29 = arith.constant 0 : index
    %c5 = arith.constant 5 : index
    %c0_30 = arith.constant 0 : index
    %c0_31 = arith.constant 0 : index
    %88 = vector.load %arg2[%c0_29, %c5, %c0_30, %c0_31] : memref<1x8x8x32xf32, #tpu.memory_space<vmem>>, vector<1x1x8x32xf32>
    %89 = vector.shape_cast %88 : vector<1x1x8x32xf32> to vector<8x32xf32>
    %90 = vector.broadcast %87 : vector<8x1xf32> to vector<8x32xf32>
    %91 = arith.mulf %90, %89 : vector<8x32xf32>
    %92 = arith.addf %86, %91 : vector<8x32xf32>
    %93 = arith.mulf %47, %57 : vector<8x1xf32>
    %c0_32 = arith.constant 0 : index
    %c6 = arith.constant 6 : index
    %c0_33 = arith.constant 0 : index
    %c0_34 = arith.constant 0 : index
    %94 = vector.load %arg2[%c0_32, %c6, %c0_33, %c0_34] : memref<1x8x8x32xf32, #tpu.memory_space<vmem>>, vector<1x1x8x32xf32>
    %95 = vector.shape_cast %94 : vector<1x1x8x32xf32> to vector<8x32xf32>
    %96 = vector.broadcast %93 : vector<8x1xf32> to vector<8x32xf32>
    %97 = arith.mulf %96, %95 : vector<8x32xf32>
    %98 = arith.addf %92, %97 : vector<8x32xf32>
    %99 = arith.mulf %49, %57 : vector<8x1xf32>
    %c0_35 = arith.constant 0 : index
    %c7 = arith.constant 7 : index
    %c0_36 = arith.constant 0 : index
    %c0_37 = arith.constant 0 : index
    %100 = vector.load %arg2[%c0_35, %c7, %c0_36, %c0_37] : memref<1x8x8x32xf32, #tpu.memory_space<vmem>>, vector<1x1x8x32xf32>
    %101 = vector.shape_cast %100 : vector<1x1x8x32xf32> to vector<8x32xf32>
    %102 = vector.broadcast %99 : vector<8x1xf32> to vector<8x32xf32>
    %103 = arith.mulf %102, %101 : vector<8x32xf32>
    %104 = arith.addf %98, %103 : vector<8x32xf32>
    %c0_38 = arith.constant 0 : index
    %c0_39 = arith.constant 0 : index
    %c0_40 = arith.constant 0 : index
    %105 = vector.load %arg6[%c0_38, %c0_39, %c0_40] : memref<1x8x32xf32, #tpu.memory_space<vmem>>, vector<1x8x32xf32>
    %106 = vector.shape_cast %105 : vector<1x8x32xf32> to vector<8x32xf32>
    %107 = vector.shape_cast %104 : vector<8x32xf32> to vector<1x8x32xf32>
    tpu.vector_store %arg6[%c0_38, %c0_39, %c0_40], %107 {strides = array<i32>} : memref<1x8x32xf32, #tpu.memory_space<vmem>>, vector<1x8x32xf32>,
    return
  }
  func.func @transform_0(%arg0: i32, %arg1: i32) -> (i32, i32, i32, i32) {
    %c0_i32 = arith.constant 0 : i32
    %c0_i32_0 = arith.constant 0 : i32
    %c0_i32_1 = arith.constant 0 : i32
    return %arg0, %c0_i32, %arg1, %c0_i32_0 : i32, i32, i32, i32
  }
  func.func @transform_1(%arg0: i32, %arg1: i32) -> (i32, i32, i32) {
    %c0_i32 = arith.constant 0 : i32
    %c0_i32_0 = arith.constant 0 : i32
    %c0_i32_1 = arith.constant 0 : i32
    return %arg0, %c0_i32, %c0_i32_0 : i32, i32, i32
  }
  func.func @transform_2(%arg0: i32, %arg1: i32) -> (i32, i32, i32) {
    %c0_i32 = arith.constant 0 : i32
    %c0_i32_0 = arith.constant 0 : i32
    %c0_i32_1 = arith.constant 0 : i32
    return %arg0, %c0_i32, %c0_i32_0 : i32, i32, i32
  }
  func.func @transform_3(%arg0: i32, %arg1: i32) -> (i32, i32, i32) {
    %c0_i32 = arith.constant 0 : i32
    %c0_i32_0 = arith.constant 0 : i32
    %c0_i32_1 = arith.constant 0 : i32
    return %arg0, %c0_i32, %c0_i32_0 : i32, i32, i32
  }
  func.func @transform_4(%arg0: i32, %arg1: i32) -> (i32, i32, i32) {
    %c0_i32 = arith.constant 0 : i32
    %c0_i32_0 = arith.constant 0 : i32
    return %arg0, %arg1, %c0_i32 : i32, i32, i32
  }
}

</mosaic_0001>

<bundles_post_ra>
// kernel: tpu_custom_call.1
= control target key start
LH: loop header
LB: loop body
LE: loop exit
PB: predicated region body
PF: predicated region fallthrough
CT: control target
= control target key end

     0   :  { %s1456_s0 = inlined_call_operand.hbm [shape: f32[2,8,16,32], index: 0, kind: input, shape index: {}]   ;;  %s1457_s1 = inlined_call_operand.hbm [shape: f32[2,32,32], index: 1, kind: input, shape index: {}]   ;;  %s1458_s2 = inlined_call_operand.vmem [shape: f32[2,1,32], index: 2, kind: input, shape index: {}]   ;;  %s1459_s3 = inlined_call_operand.vmem [shape: f32[2,1,32], index: 3, kind: input, shape index: {}]   ;;  %s1460_s4 = inlined_call_operand.hbm [shape: f32[2,16,32], index: 4, kind: output, shape index: {}]  }
   0x1   :  { %1475 = sst [smem:[#allocation15_spill]] %s1460_s4 }
   0x2   :  { %9 = vsyncpa [#allocation3], 0 }
   0x3   :  { %11 = vsyncpa [#allocation3 + $0x1], 0 }
   0x4   :  { %12 = vsyncpa [#allocation6], 0 }
   0x5   :  { %14 = vsyncpa [#allocation6 + $0x1], 0 }
   0x6   :  { %15 = vsyncpa [#allocation4], 0 }
   0x7   :  { %17 = vsyncpa [#allocation4 + $0x1], 0  ;;  %s1090_s15 = smov 0   ;;  %s1092_s16 = smov 0  }
   0x8   :  { %s1094_s17 = smov 0   ;;  %s1096_s18 = smov 0  }
   0x9   :  { %s1098_s19 = smov 0   ;;  %s1100_s20 = smov 0  }
   0xa   :  { %s1102_s21 = smov 0   ;;  %s1104_s22 = smov 0  }
   0xb   :  { %s1106_s23 = smov 0   ;;  %s1108_s24 = smov 0  }
   0xc   :  { %s1110_s25 = smov 0  }
   0xd LB: > { %s1461_s26 = sadd.s32 4294967295, %s1057_s25   ;;  %s673_s27 = sadd.s32 4294967294, %s1057_s25   ;;  %s1057_s25 = sphi %s1110_s25, %s23_s25   ;;  %s1053_s24 = sphi %s1108_s24, %s1513_s24   ;;  %s1049_s23 = sphi %s1106_s23, %s1512_s23   ;;  %s1045_s22 = sphi %s1104_s22, %s1511_s22   ;;  %s1041_s21 = sphi %s1102_s21, %s1510_s21   ;;  %s1037_s20 = sphi %s1100_s20, %s1509_s20   ;;  %s1033_s19 = sphi %s1098_s19, %s1508_s19   ;;  %s1029_s18 = sphi %s1096_s18, %s1507_s18   ;;  %s1025_s17 = sphi %s1094_s17, %s1506_s17   ;;  %s1021_s16 = sphi %s1092_s16, %s1505_s16   ;;  %s1017_s15 = sphi %s1090_s15, %s1504_s15  }
   0xe   : > { %s32_s28 = sadd.s32 1, %s1049_s23  ;;  %s35_s29 = sadd.s32 1, %s1053_s24 }
   0xf   : > { %p33_p0 = scmp.ge.s32.totalorder %s32_s28, 2  ;;  %s44_s30 = sadd.s32 1, %s1037_s20 }
  0x10   : > { %p51_p1 = scmp.ne.s32.totalorder %s1037_s20, %s1033_s19  ;;  %p1469_p2 = scmp.eq.s32.totalorder %s1057_s25, 0 }
  0x11   : > { %s1515_s28 = smov (%p33_p0, %s32_s28), 0  ;;  %s1517_s29 = smov (!%p33_p0, %s35_s29), %s1053_s24 }
  0x12   : > { %1476 = sst [smem:[#allocation11_spill]] %s1515_s28  ;;  %s40_s5 = ssub.s32 %s1049_s23, %s1515_s28 }
  0x13   : > { %p1160_p3 = por %p1469_p2, %p51_p1  ;;  %p37_p4 = scmp.ge.s32.totalorder %s1517_s29, 2 }
  0x14   : > { %p1470_p5 = scmp.ne.s32.totalorder %s1033_s19, %s1029_s18  ;;  %p161_p6 = scmp.eq.s32.totalorder %s1461_s26, 3 }
  0x15   : > { %p167_p7 = scmp.eq.s32.totalorder %s673_s27, 3  ;;  %s1519_s29 = smov (%p37_p4, %s1517_s29), 0 }
  0x16   : > { %1478 = sst [smem:[#allocation12_spill]] %s1519_s29  ;;  %p1170_p8 = por %p161_p6, %p51_p1 }
  0x17   : > { %p1177_p9 = por %p167_p7, %p1470_p5  ;;  %s1183_s9 = ssub.s32 %s1053_s24, %s1519_s29 }
  0x18   : > { %s1479_s7 = scalar_select %p1170_p8, 1, 0 }
  0x19   : > { %s1481_s8 = scalar_select %p1177_p9, 1, 0 }
  0x1a   : > { %1480 = sst [smem:[#allocation13_spill]] %s1479_s7  ;;  %s41_s10 = sor.u32 %s40_s5, %s1183_s9 }
  0x1b   : > { %1482 = sst [smem:[#allocation14_spill]] %s1481_s8  ;;  %p42_p11 = scmp.eq.s32.totalorder %s41_s10, 0 }
  0x1c   : > { %p1468_p12 = scmp.lt.s32.totalorder %s1057_s25, 4  ;;  %s187_s11 = sand.u32 1, %s1037_s20  }
  0x1d   : > { %s677_s12 = sshll.u32 %s1053_s24, 4  ;;  %s676_s14 = sshll.u32 %s187_s11, 6 }
  0x1e   : > { %s1191_s13 = scalar_select %p42_p11, %s1037_s20, %s44_s30  }
  0x1f   : > { %s196_s27 = sadd.s32 %s1049_s23, %s677_s12  ;;  %s191_s28 = scalar_lea.vmem [#allocation2], %s676_s14 }
  0x20   : > { %s678_s26 = sshll.u32 %s196_s27, 7  ;;  %s199_s8 = sshll.u32 %s191_s28, 4  ;;  %s1199_s8 = int_to_ptr.vmem [resolvable:$true] %s199_s8 }
  0x21   : > { %s1197_s29 = scalar_lea.hbm %s1456_s0, %s678_s26  ;;  %p1205_p13 = pnand %p1468_p12, %p1160_p3 }
  0x22   : > { %s1210_s28 = scalar_lea.sflag [#allocation3], %s187_s11  ;;  %s871_s4 = scalar_lea.hbm %s1197_s29, 1024 }
  0x23   : > { %p872_p1 = scmp.ne.s32.totalorder %s1197_s29, %s871_s4  ;;  %p873_p4 = pneg %p1205_p13 }
  0x24   : > { %s876_s6 = scalar_lea.hbm %s1456_s0, 4096  ;;  %p877_p3 = scmp.lt.u32.totalorder %s1197_s29, %s1456_s0 }
  0x25   : > { %p874_p6 = pnand %p873_p4, %p872_p1  ;;  %p878_p11 = scmp.lt.u32.totalorder %s876_s6, %s871_s4 }
  0x26   : > { %p880_p2 = scmp.lt.u32.totalorder %s871_s4, %s1197_s29 }
  0x27   : > { %p875_p7 = pneg %p874_p6  ;;  %p879_p12 = por %p878_p11, %p877_p3 }
  0x29   : > { %p881_p5 = por %p880_p2, %p879_p12 }
  0x2b   : > { %p882_p10 = pnand %p881_p5, %p875_p7 }
  0x2d   : > { %885 = shalt.err (!%p882_p10)
}
  0x2e   : > { %s886_s11 = scalar_lea.vmem %s1199_s8, 1024  ;;  %s1059_s12 = smov [#allocation2]  }
  0x2f   : > { %p887_p1 = scmp.ne.s32.totalorder %s1199_s8, %s886_s11  ;;  %s891_s14 = sshll.u32 %s1059_s12, 4  ;;  %s892_s14 = int_to_ptr.vmem [resolvable:$false] %s891_s14 }
  0x30   : > { %s893_s27 = scalar_lea.vmem %s892_s14, 2048  ;;  %p894_p9 = scmp.lt.s32.totalorder %s1199_s8, %s892_s14 }
  0x31   : > { %p889_p6 = pnand %p887_p1, %p873_p4  ;;  %p895_p3 = scmp.lt.s32.totalorder %s893_s27, %s886_s11 }
  0x33   : > { %p890_p0 = pneg %p889_p6  ;;  %p896_p11 = por %p895_p3, %p894_p9 }
  0x35   : > { %p897_p2 = pnand %p896_p11, %p890_p0 }
  0x37   : > { %900 = shalt.err (!%p897_p2)
}
  0x38   : > { %s1060_s4 = smov 256   ;;  %s1471_s26 = smov 128  }
  0x39   : > { %s1062_s5 = smov 8   ;;  %p240_p5 = scmp.lt.s32.totalorder %s1057_s25, 5 }
  0x3a   : > { %736 = dma.hbm_to_vmem [thread:$0]  (!%p1205_p13), %s1197_s29, 1024, %s1199_s8, %s1210_s28, %s1060_s4, %s1471_s26, %s1062_s5  }
  0x3b   : > { %p1484_p9 = scmp.ge.s32.totalorder %s1057_s25, 1  ;;  %s1486_s7 = sadd.s32 4294967295, %s1057_s25  }
  0x3c   : > { %p58_p12 = scmp.eq.s32.totalorder %s1486_s7, 0  ;;  %s70_s10 = sadd.s32 1, %s1025_s17 }
  0x3d   : > { %p1243_p10 = pnand %p1484_p9, %p240_p5  ;;  %p1487_p0 = scmp.eq.s32.totalorder %s1183_s9, 0 }
  0x3e   : > { %p1488_p4 = scmp.ne.s32.totalorder %s1033_s19, %s1029_s18  ;;  %p77_p1 = scmp.ne.s32.totalorder %s1025_s17, %s1021_s16 }
  0x3f   : > { %s1253_s11 = scalar_select %p1487_p0, %s1025_s17, %s70_s10  }
  0x40   : > { %p1258_p7 = por %p58_p12, %p1488_p4  ;;  %p83_p13 = scmp.ne.s32.totalorder %s1021_s16, %s1017_s15 }
  0x41   : > { %s209_s29 = sand.u32 1, %s1025_s17   ;;  %p1490_p6 = scmp.eq.s32.totalorder %s1057_s25, 0 }
  0x42   : > { %s1489_s12 = scalar_select %p1258_p7, 1, 0 }
  0x43   : > { %p79_p3 = por %p77_p1, %p1490_p6  ;;  %p1269_p11 = por %p83_p13, %p58_p12 }
  0x44   : > { %s679_s30 = sshll.u32 %s209_s29, 5  ;;  %s704_s28 = sshll.u32 %s1053_s24, 9 }
  0x45   : > { %s1491_s8 = scalar_select %p1269_p11, 1, 0 }
  0x46   : > { %s1277_s27 = scalar_lea.hbm %s1457_s1, %s704_s28  ;;  %s213_s4 = scalar_lea.vmem [#allocation5], %s679_s30 }
  0x47   : > { %s220_s15 = sshll.u32 %s213_s4, 4  ;;  %p1492_p2 = scmp.lt.s32.totalorder %s1057_s25, 4  ;;  %s1279_s15 = int_to_ptr.vmem [resolvable:$true] %s220_s15 }
  0x48   : > { %s1287_s10 = scalar_lea.sflag [#allocation6], %s209_s29  ;;  %s901_s14 = scalar_lea.hbm %s1277_s27, 512 }
  0x49   : > { %p1283_p5 = pnand %p1492_p2, %p79_p3  ;;  %p902_p9 = scmp.ne.s32.totalorder %s1277_s27, %s901_s14 }
  0x4a   : > { %s906_s9 = scalar_lea.hbm %s1457_s1, 1024  ;;  %p907_p1 = scmp.lt.u32.totalorder %s1277_s27, %s1457_s1 }
  0x4b   : > { %p903_p12 = pneg %p1283_p5  ;;  %p908_p13 = scmp.lt.u32.totalorder %s906_s9, %s901_s14 }
  0x4c   : > { %p910_p3 = scmp.lt.u32.totalorder %s901_s14, %s1277_s27 }
  0x4d   : > { %p904_p0 = pnand %p903_p12, %p902_p9  ;;  %p909_p6 = por %p908_p13, %p907_p1 }
  0x4f   : > { %p905_p4 = pneg %p904_p0  ;;  %p911_p2 = por %p910_p3, %p909_p6 }
  0x51   : > { %p912_p8 = pnand %p911_p2, %p905_p4 }
  0x53   : > { %915 = shalt.err (!%p912_p8)
}
  0x54   : > { %s916_s29 = scalar_lea.vmem %s1279_s15, 512  ;;  %s1063_s30 = smov [#allocation5]  }
  0x55   : > { %p917_p9 = scmp.ne.s32.totalorder %s1279_s15, %s916_s29  ;;  %s921_s28 = sshll.u32 %s1063_s30, 4  ;;  %s922_s28 = int_to_ptr.vmem [resolvable:$false] %s921_s28 }
  0x56   : > { %s923_s26 = scalar_lea.vmem %s922_s28, 1024  ;;  %p924_p7 = scmp.lt.s32.totalorder %s1279_s15, %s922_s28 }
  0x57   : > { %p919_p0 = pnand %p917_p9, %p903_p12  ;;  %p925_p1 = scmp.lt.s32.totalorder %s923_s26, %s916_s29 }
  0x59   : > { %p920_p11 = pneg %p919_p0  ;;  %p926_p13 = por %p925_p1, %p924_p7 }
  0x5b   : > { %p927_p6 = pnand %p926_p13, %p920_p11 }
  0x5d   : > { %930 = shalt.err (!%p927_p6)
}
  0x5e   : > { %s1494_s14 = smov 128   ;;  %244 = sbr.rel (%p1243_p10) target bundleno = 579 (0x243), region = 36 }
  0x5f   : > { %739 = dma.hbm_to_vmem [thread:$0]  (!%p1283_p5), %s1277_s27, 512, %s1279_s15, %s1287_s10, %s1494_s14, %s1494_s14, %s1062_s5  }
  0x60   : > { %s1321_s9 = sand.u32 (!%p1243_p10), 1, %s1033_s19   ;;  %p1495_p8 = scmp.ne.s32.totalorder (!%p1243_p10), %s1489_s12, 0 }
  0x61   : > { %s683_s4 = sshll.u32 (!%p1243_p10), %s1321_s9, 6  ;;  %s247_s29 = scalar_lea.sflag (!%p1243_p10), [#allocation3], %s1321_s9 }
  0x62   : > { %s250_s30 = scalar_lea.vmem (!%p1243_p10), [#allocation2], %s683_s4 }
  0x65   : > { %1004 = dma.done.wait (%p1495_p8), %s247_s29, 1024  }
  0x66   : > { %1006 = vsyncadd (%p1495_p8), %s247_s29, 4294966272  ;;  %s255_s5 = sand.u32 1, %s1021_s16   ;;  %p1496_p10 = scmp.ne.s32.totalorder %s1491_s8, 0 }
  0x67   : > { %s684_s27 = sshll.u32 %s255_s5, 5  ;;  %s256_s6 = scalar_lea.sflag [#allocation6], %s255_s5 }
  0x68   : > { %s259_s15 = scalar_lea.vmem [#allocation5], %s684_s27 }
  0x69   : > { %1008 = dma.done.wait (%p1496_p10), %s256_s6, 512  }
  0x6a   : > { %1010 = vsyncadd (%p1496_p10), %s256_s6, 4294966784  ;;  %v302_v0 = vld [vmem:[%s259_s15] sm:$0xff]  ;;  %v303_v1 = vld [vmem:[%s259_s15 + $0x8] sm:$0xff]  ;;  %vm328_vm0 = vcmask 261120   ;;  %p295_p7 = scmp.lt.s32.totalorder %s1045_s22, 1  ;;  %s685_s4 = sshll.u32 %s1321_s9, 3 }
  0x6b   : > { %v304_v2 = vld [vmem:[%s259_s15 + $0x10] sm:$0xff]  ;;  %v306_v3 = vpack.c.bf16 %v303_v1, %v302_v0  ;;  %v305_v4 = vld [vmem:[%s259_s15 + $0x18] sm:$0xff]  ;;  %v1334_v5 = vld [vmem:[%s250_s30] sm:$0xff]  ;;  %s700_s29 = sshll.u32 %s1045_s22, 1  ;;  %s294_s6 = scalar_lea.vmem [#allocation7], %s685_s4 }
  0x6c   : > { %v1336_v6 = vld [vmem:[%s250_s30 + $0x8] sm:$0xff]  ;;  %v307_v7 = vpack.c.bf16 %v305_v4, %v304_v2  ;;  %v1340_v9 = vld [vmem:[%s250_s30 + $0x20] sm:$0xff]  ;;  %v1342_v10 = vld [vmem:[%s250_s30 + $0x10] sm:$0xff]  ;;  %s296_s12 = scalar_select %p295_p7, %s1045_s22, 1 }
  0x6d   : > { %v318_v8 = vpack.c.bf16 %v1336_v6, %v1334_v5  ;;  %711 = vmatprep.subr.bf16.mxu0 %v306_v3  ;;  %723 = vmatprep.subr.bf16.mxu1 %v306_v3  ;;  %v1344_v11 = vld [vmem:[%s250_s30 + $0x28] sm:$0xff]  ;;  %v1346_v12 = vld [vmem:[%s250_s30 + $0x18] sm:$0xff]  ;;  %v1350_v14 = vld [vmem:[%s250_s30 + $0x30] sm:$0xff]  ;;  %s542_s5 = sadd.s32 %s1041_s21, %s700_s29  ;;  %s546_s15 = sshll.u32 %s294_s6, 4  ;;  %s1394_s15 = int_to_ptr.vmem [resolvable:$true] %s546_s15 }
  0x6e   : > { %712 = vmatpush3.bf16.msra.mxu0 %v306_v3  ;;  %725 = vmatpush3.bf16.msra.mxu1 %v306_v3  ;;  %v320_v13 = vpack.c.bf16 %v1344_v11, %v1340_v9  ;;  %v1352_v15 = vld [vmem:[%s250_s30 + $0x38] sm:$0xff]  ;;  %v319_v16 = vpack.c.bf16 %v1346_v12, %v1342_v10  ;;  %s297_s10 = scalar_lea.vmem %s1458_s2, %s296_s12  ;;  %s300_s14 = scalar_lea.vmem %s1459_s3, %s296_s12 }
  0x6f   : > { %713 = vmatprep.subr.bf16.mxu0 %v307_v7  ;;  %715 = vmatprep.mubr.msk.bf16.mxu0 %vm328_vm0, %v318_v8  ;;  %v321_v17 = vpack.c.bf16 %v1352_v15, %v1350_v14  ;;  %v686_v18 = vld [vmem:[%s297_s10] ss:$0 sm:$0xff]  ;;  %s1497_s30 = sld [smem:[#allocation13_spill]]  ;;  %s701_s27 = sshll.u32 %s542_s5, 7 }
  0x70   : > { %724 = vmatprep.subr.bf16.mxu1 %v307_v7  ;;  %719 = vmatprep.mubr.msk.bf16.mxu1 %vm328_vm0, %v320_v13  ;;  %v691_v35 = vld [vmem:[%s300_s14] ss:$0 sm:$0xff]  ;;  %s1498_s8 = sld [smem:[#allocation15_spill]]  ;;  %s531_s21 = scalar_lea.sflag [#allocation4], %s1321_s9 }
  0x71   : > { %s931_s10 = scalar_lea.vmem %s1394_s15, 128  ;;  %s1064_s28 = smov [#allocation7]  }
  0x72   : > { %714 = vmatpush3.bf16.msra.mxu0 %v307_v7  ;;  %726 = vmatpush3.bf16.msra.mxu1 %v307_v7  ;;  %p932_p11 = scmp.ne.s32.totalorder %s1394_s15, %s931_s10  ;;  %s935_s26 = sshll.u32 %s1064_s28, 4  ;;  %s936_s26 = int_to_ptr.vmem [resolvable:$false] %s935_s26 }
  0x73   : > { %s937_s14 = scalar_lea.vmem %s936_s26, 256  ;;  %p938_p3 = scmp.lt.s32.totalorder %s1394_s15, %s936_s26 }
  0x74   : > { %p939_p2 = scmp.lt.s32.totalorder %s937_s14, %s931_s10 }
  0x75   : > { %716 = vmatmul.mubr.msk.bf16.vlgmr.msra.gmra.mrb[0].mxu0 %vm328_vm0, %v319_v16  ;;  %720 = vmatmul.mubr.msk.bf16.vlgmr.msra.gmra.mrb[0].mxu1 %vm328_vm0, %v321_v17  ;;  %p1499_p5 = scmp.ne.s32.totalorder %s1497_s30, 0 }
  0x76   : > { %s1392_s7 = scalar_lea.hbm %s1498_s8, %s701_s27  ;;  %p940_p9 = por %p939_p2, %p938_p3 }
  0x77   : > { %p933_p12 = pnand %p932_p11, %p1499_p5 }
  0x79   : > { %p934_p4 = pneg %p933_p12 }
  0x7b   : > { %p941_p0 = pnand %p940_p9, %p934_p4 }
 0x148   : > { %v717_v19 = vpop.f32.mrb[0].mxu0  ;;  %v721_v20 = vpop.f32.mrb[0].mxu1 }
 0x149   : > { %v384_v21 = vadd.f32 %v717_v19, %v686_v18  ;;  %v375_v22 = vpop.f32.mrb[1].mxu0  ;;  %v391_v23 = vpop.f32.mrb[1].mxu1  ;;  %v400_v34 = vadd.f32 %v721_v20, %v686_v18 }
 0x14a   : > { %v376_v24 = vadd.f32 %v686_v18, %v375_v22  ;;  %v718_v25 = vpop.f32.mrb[2].mxu0  ;;  %v722_v26 = vpop.f32.mrb[2].mxu1  ;;  %v392_v31 = vadd.f32 %v686_v18, %v391_v23 }
 0x14b   : > { %837 = vtanh.f32 %v384_v21  ;;  %v387_v27 = vadd.f32 %v718_v25, %v686_v18  ;;  %v378_v28 = vpop.f32.mrb[3].mxu0  ;;  %v394_v29 = vpop.f32.mrb[3].mxu1  ;;  %v403_v33 = vadd.f32 %v722_v26, %v686_v18 }
 0x14c   : > { %839 = vtanh.f32 %v376_v24  ;;  %v379_v30 = vadd.f32 %v686_v18, %v378_v28  ;;  %v395_v32 = vadd.f32 %v686_v18, %v394_v29 }
 0x14d   : > { %841 = vtanh.f32 %v387_v27 }
 0x14e   : > { %843 = vtanh.f32 %v379_v30 }
 0x14f   : > { %845 = vtanh.f32 %v392_v31 }
 0x150   : > { %847 = vtanh.f32 %v395_v32 }
 0x151   : > { %849 = vtanh.f32 %v403_v33 }
 0x152   : > { %851 = vtanh.f32 %v400_v34 }
 0x155   : > { %v838_v36 = vpop.eup %837 }
 0x156   : > { %v840_v37 = vpop.eup %839  ;;  %v422_v38 = vmul.f32 %v838_v36, %v691_v35 }
 0x157   : > { %v842_v39 = vpop.eup %841  ;;  %v420_v40 = vmul.f32 %v840_v37, %v691_v35 }
 0x158   : > { %v844_v41 = vpop.eup %843  ;;  %v434_v42 = vsel %vm328_vm0, %v422_v38, 0.0  ;;  %v423_v43 = vmul.f32 %v842_v39, %v691_v35 }
 0x159   : > { %435 = vadd.xlane.f32.xlu1 %v434_v42  ;;  %v428_v44 = vsel %vm328_vm0, %v420_v40, 0.0  ;;  %v421_v45 = vmul.f32 %v844_v41, %v691_v35  ;;  %v846_v46 = vpop.eup %845 }
 0x15a   : > { %429 = vadd.xlane.f32.xlu0 %v428_v44  ;;  %v424_v47 = vmul.f32 %v846_v46, %v691_v35  ;;  %v848_v48 = vpop.eup %847  ;;  %v437_v49 = vsel %vm328_vm0, %v423_v43, 0.0 }
 0x15b   : > { %v850_v50 = vpop.eup %849  ;;  %v431_v51 = vsel %vm328_vm0, %v421_v45, 0.0  ;;  %v425_v52 = vmul.f32 %v848_v48, %v691_v35 }
 0x15c   : > { %v852_v53 = vpop.eup %851  ;;  %v440_v55 = vsel %vm328_vm0, %v424_v47, 0.0  ;;  %v427_v56 = vmul.f32 %v850_v50, %v691_v35 }
 0x15d   : > { %438 = vadd.xlane.f32.xlu1 %v437_v49  ;;  %v443_v54 = vsel %vm328_vm0, %v425_v52, 0.0  ;;  %v426_v57 = vmul.f32 %v852_v53, %v691_v35 }
 0x15e   : > { %432 = vadd.xlane.f32.xlu0 %v431_v51  ;;  %v449_v58 = vsel %vm328_vm0, %v427_v56, 0.0 }
 0x15f   : > { %v446_v59 = vsel %vm328_vm0, %v426_v57, 0.0 }
 0x161   : > { %444 = vadd.xlane.f32.xlu1 %v443_v54 }
 0x162   : > { %441 = vadd.xlane.f32.xlu0 %v440_v55 }
 0x165   : > { %450 = vadd.xlane.f32.xlu1 %v449_v58 }
 0x166   : > { %447 = vadd.xlane.f32.xlu0 %v446_v59 }
 0x1e6   : > { %v436_v60 = vpop.xlane.xlu1 %435 }
 0x1e7   : > { %v430_v61 = vpop.xlane.xlu0 %429 }
 0x1ea   : > { %v439_v62 = vpop.xlane.xlu1 %438 }
 0x1eb   : > { %v433_v63 = vpop.xlane.xlu0 %432 }
 0x1ec   : > { %v452_v0 = vmax.f32 %v430_v61, %v433_v63 }
 0x1ee   : > { %v453_v1 = vmax.f32 %v452_v0, %v436_v60  ;;  %v445_v4 = vpop.xlane.xlu1 %444 }
 0x1ef   : > { %v442_v2 = vpop.xlane.xlu0 %441 }
 0x1f0   : > { %v454_v3 = vmax.f32 %v453_v1, %v439_v62 }
 0x1f2   : > { %v455_v7 = vmax.f32 %v454_v3, %v442_v2  ;;  %v451_v17 = vpop.xlane.xlu1 %450 }
 0x1f3   : > { %v448_v13 = vpop.xlane.xlu0 %447 }
 0x1f4   : > { %v456_v8 = vmax.f32 %v455_v7, %v445_v4 }
 0x1f6   : > { %v457_v16 = vmax.f32 %v456_v8, %v448_v13 }
 0x1f8   : > { %v458_v18 = vmax.f32 %v457_v16, %v451_v17 }
 0x1fa   : > { %v459_v19 = vsub.f32 %v430_v61, %v458_v18  ;;  %v462_v20 = vsub.f32 %v433_v63, %v458_v18  ;;  %v465_v21 = vsub.f32 %v436_v60, %v458_v18  ;;  %v468_v22 = vsub.f32 %v439_v62, %v458_v18 }
 0x1fb   : > { %v471_v26 = vsub.f32 %v442_v2, %v458_v18  ;;  %v474_v28 = vsub.f32 %v445_v4, %v458_v18  ;;  %v477_v30 = vsub.f32 %v448_v13, %v458_v18  ;;  %v480_v32 = vsub.f32 %v451_v17, %v458_v18 }
 0x1fc   : > { %v460_v23 = vmul.f32 1.442695, %v459_v19  ;;  %v463_v24 = vmul.f32 1.442695, %v462_v20  ;;  %v466_v25 = vmul.f32 1.442695, %v465_v21 }
 0x1fd   : > { %v469_v27 = vmul.f32 1.442695, %v468_v22  ;;  %v472_v29 = vmul.f32 1.442695, %v471_v26  ;;  %v475_v31 = vmul.f32 1.442695, %v474_v28 }
 0x1fe   : > { %853 = vpow2.f32 %v460_v23  ;;  %v478_v33 = vmul.f32 1.442695, %v477_v30  ;;  %v481_v34 = vmul.f32 1.442695, %v480_v32 }
 0x1ff   : > { %855 = vpow2.f32 %v463_v24 }
 0x200   : > { %857 = vpow2.f32 %v466_v25 }
 0x201   : > { %859 = vpow2.f32 %v469_v27 }
 0x202   : > { %861 = vpow2.f32 %v472_v29 }
 0x203   : > { %863 = vpow2.f32 %v475_v31 }
 0x204   : > { %865 = vpow2.f32 %v478_v33 }
 0x205   : > { %867 = vpow2.f32 %v481_v34 }
 0x208   : > { %v854_v35 = vpop.eup %853 }
 0x209   : > { %v856_v36 = vpop.eup %855 }
 0x20a   : > { %v483_v37 = vadd.f32 %v856_v36, %v854_v35  ;;  %v858_v38 = vpop.eup %857 }
 0x20b   : > { %v860_v40 = vpop.eup %859 }
 0x20c   : > { %v484_v39 = vadd.f32 %v858_v38, %v483_v37  ;;  %v862_v42 = vpop.eup %861 }
 0x20d   : > { %v864_v44 = vpop.eup %863 }
 0x20e   : > { %v485_v41 = vadd.f32 %v860_v40, %v484_v39  ;;  %v866_v46 = vpop.eup %865 }
 0x20f   : > { %v868_v48 = vpop.eup %867 }
 0x210   : > { %v486_v43 = vadd.f32 %v862_v42, %v485_v41 }
 0x212   : > { %v487_v45 = vadd.f32 %v864_v44, %v486_v43 }
 0x214   : > { %v488_v47 = vadd.f32 %v866_v46, %v487_v45 }
 0x216   : > { %v489_v49 = vadd.f32 %v868_v48, %v488_v47 }
 0x218   : > { %869 = vrcp.f32 %v489_v49 }
 0x222   : > { %v870_v50 = vpop.eup %869 }
 0x223   : > { %v491_v51 = vmul.f32 %v870_v50, %v854_v35  ;;  %v494_v52 = vmul.f32 %v870_v50, %v856_v36  ;;  %v499_v53 = vmul.f32 %v870_v50, %v858_v38  ;;  %v504_v56 = vmul.f32 %v870_v50, %v860_v40 }
 0x224   : > { %v509_v59 = vmul.f32 %v870_v50, %v862_v42  ;;  %v514_v62 = vmul.f32 %v870_v50, %v864_v44  ;;  %v519_v63 = vmul.f32 %v870_v50, %v866_v46  ;;  %v524_v2 = vmul.f32 %v870_v50, %v868_v48 }
 0x225   : > { %v493_v54 = vmul.f32 %v491_v51, %v1334_v5  ;;  %v497_v55 = vmul.f32 %v494_v52, %v1336_v6  ;;  %v502_v58 = vmul.f32 %v499_v53, %v1342_v10  ;;  %v507_v61 = vmul.f32 %v504_v56, %v1346_v12 }
 0x226   : > { %v512_v1 = vmul.f32 %v509_v59, %v1340_v9  ;;  %v517_v6 = vmul.f32 %v514_v62, %v1344_v11  ;;  %v522_v10 = vmul.f32 %v519_v63, %v1350_v14  ;;  %v527_v4 = vmul.f32 %v524_v2, %v1352_v15 }
 0x227   : > { %v498_v57 = vadd.f32 %v497_v55, %v493_v54 }
 0x229   : > { %v503_v60 = vadd.f32 %v502_v58, %v498_v57 }
 0x22b   : > { %v508_v0 = vadd.f32 %v507_v61, %v503_v60 }
 0x22d   : > { %v513_v5 = vadd.f32 %v512_v1, %v508_v0 }
 0x22f   : > { %v518_v3 = vadd.f32 %v517_v6, %v513_v5 }
 0x231   : > { %v523_v12 = vadd.f32 %v522_v10, %v518_v3 }
 0x233   : > { %v528_v7 = vadd.f32 %v527_v4, %v523_v12 }
 0x235   : > { %529 = vst.msk [vmem:[%s294_s6] sm:$0xff] %vm328_vm0, %v528_v7 }
 0x236   : > { %944 = shalt.err (!%p941_p0)
}
 0x237   : > { %s945_s9 = scalar_lea.hbm %s1392_s7, 128  ;;  %s949_s5 = scalar_lea.hbm %s1498_s8, 512 }
 0x238   : > { %p946_p1 = scmp.ne.s32.totalorder %s1392_s7, %s945_s9  ;;  %p950_p8 = scmp.lt.u32.totalorder %s1392_s7, %s1498_s8 }
 0x239   : > { %p951_p10 = scmp.lt.u32.totalorder %s949_s5, %s945_s9  ;;  %p953_p11 = scmp.lt.u32.totalorder %s945_s9, %s1392_s7 }
 0x23a   : > { %p947_p13 = pnand %p946_p1, %p1499_p5 }
 0x23b   : > { %p952_p7 = por %p951_p10, %p950_p8 }
 0x23c   : > { %p948_p6 = pneg %p947_p13 }
 0x23d   : > { %p954_p12 = por %p953_p11, %p952_p7 }
 0x23f   : > { %p955_p4 = pnand %p954_p12, %p948_p6 }
 0x241   : > { %958 = shalt.err (!%p955_p4)
}
 0x242   : > { %731 = dma.vmem_to_hbm [thread:$0]  (%p1499_p5), %s1394_s15, 128, %s1392_s7, %s531_s21  }
 0x243 PF: > { %s1500_s22 = sld [smem:[#allocation14_spill]]  ;;  %p745_p3 = scmp.ge.s32.totalorder %s1057_s25, 2 }
 0x244   : > { %s558_s12 = sand.u32 1, %s1029_s18  }
 0x245   : > { %s559_s10 = scalar_lea.sflag [#allocation4], %s558_s12 }
 0x249   : > { %p1501_p2 = scmp.ne.s32.totalorder %s1500_s22, 0 }
 0x24b   : > { %p741_p9 = pnand %p745_p3, %p1501_p2 }
 0x24d   : > { %1012 = dma.done.wait (!%p741_p9), %s559_s10, 128  }
 0x24e   : > { %1014 = vsyncadd (!%p741_p9), %s559_s10, 4294967168  ;;  %s23_s25 = sadd.s32 1, %s1057_s25   ;;  %s1502_s30 = sld [smem:[#allocation11_spill]] }
 0x24f   : > { %p20_p0 = scmp.ge.s32.totalorder %s23_s25, 6   ;;  %s1503_s7 = sld [smem:[#allocation12_spill]] }
 0x250   : > { %s1504_s15 = smov %s1021_s16  ;;  %s1505_s16 = smov %s1025_s17 }
 0x251   : > { %s1506_s17 = smov %s1253_s11  ;;  %s1507_s18 = smov %s1033_s19 }
 0x252   : > { %s1508_s19 = smov %s1037_s20  ;;  %s1509_s20 = smov %s1191_s13 }
 0x253   : > { %s1510_s21 = smov %s1049_s23  ;;  %s1511_s22 = smov %s1053_s24 }
 0x254   : > { %s1512_s23 = smov %s1502_s30  ;;  %22 = sbr.rel (!%p20_p0) target bundleno = 13 (0xd), region = 107 }
 0x255   : > { %s1513_s24 = smov %s1503_s7 }
 0x25b   :  { %564 = vsyncpa [#allocation3], 1 }
 0x25c   :  { %566 = vsyncpa [#allocation3 + $0x1], 1 }
 0x25d   :  { %567 = vsyncpa [#allocation6], 1 }
 0x25e   :  { %569 = vsyncpa [#allocation6 + $0x1], 1 }
 0x25f   :  { %570 = vsyncpa [#allocation4], 1 }
 0x260   :  { %572 = vsyncpa [#allocation4 + $0x1], 1 }

</bundles_post_ra>
